<compile_context>
chip_gen: v7x
topology: tpu7x:2x2x1
jax: 0.10.0
libtpu: 0.0.40
codegen_flags: <defaults>
</compile_context>

<pallas_src>
import functools

import jax
import jax.numpy as jnp
from jax.experimental import pallas as pl
from jax.experimental.pallas import tpu as pltpu

BN_EPS = 1e-5


def _round_up(n, m):
    return ((n + m - 1) // m) * m


def _vmem_capacity_bytes():
    try:
        return int(pltpu.get_tpu_info().vmem_capacity_bytes)
    except Exception:
        return 64 * 1024 * 1024


def _clamp_vmem(requested_bytes):
    cap = _vmem_capacity_bytes()
    return int(min(max(requested_bytes, 8 * 1024 * 1024), int(0.85 * cap)))


# ----------------------------------------------------------------------------
# Kernels
# ----------------------------------------------------------------------------
def _first_linear_kernel(x_ref, w0t_ref, b0_ref, out_ref):
    """encoder_num_layers == 1 path: just the first Linear."""
    # TODO(synk): batch-tile this path for very large batch * f_pad.
    out_ref[...] = (
        jnp.dot(x_ref[...], w0t_ref[...], preferred_element_type=jnp.float32)
        + b0_ref[...]
    ).astype(out_ref.dtype)


def _encoder_kernel(x_ref, w0t_ref, b0_ref, wt_ref, gbb_ref, out_ref, h_ref,
                    *, l_blk):
    """Grid over blocks of l_blk hidden layers.

    h_ref is the resident bf16 activation carried between grid steps; within a
    step the activation stays f32 across the statically-unrolled l_blk layers.
    """
    step = pl.program_id(0)
    last_step = pl.num_programs(0) - 1

    # First Linear runs once (x / w0t / b0 are resident, single-buffered).
    @pl.when(step == 0)
    def _():
        h0 = (
            jnp.dot(x_ref[...], w0t_ref[...], preferred_element_type=jnp.float32)
            + b0_ref[...]
        )
        h_ref[...] = h0.astype(h_ref.dtype)

    h = h_ref[...].astype(jnp.float32)        # (B, Ep) f32 working value
    inv_b = 1.0 / h.shape[0]

    for i in range(l_blk):                    # statically unrolled layers
        gamma = gbb_ref[i, 0:1, :]            # (1, Ep) f32 row slices
        beta = gbb_ref[i, 1:2, :]
        bias = gbb_ref[i, 2:3, :]

        # Single-pass BatchNorm1d statistics (training mode, biased variance).
        s1 = jnp.sum(h, axis=0, keepdims=True)
        s2 = jnp.sum(h * h, axis=0, keepdims=True)
        mean = s1 * inv_b
        var = jnp.maximum(s2 * inv_b - mean * mean, 0.0)
        scale = gamma * jax.lax.rsqrt(var + BN_EPS)     # rsqrt -> EUP slot
        shift = beta - mean * scale
        a = jnp.maximum(h * scale + shift, 0.0)         # fused BN + ReLU

        # Hidden Linear: bf16 operands on the MXU, f32 accumulation,
        # pre-transposed weight (no in-kernel transpose).
        h = (
            jnp.dot(a.astype(jnp.bfloat16), wt_ref[i],
                    preferred_element_type=jnp.float32)
            + bias
        )

    @pl.when(step != last_step)
    def _():
        h_ref[...] = h.astype(h_ref.dtype)

    @pl.when(step == last_step)
    def _():
        out_ref[...] = h.astype(out_ref.dtype)


# ----------------------------------------------------------------------------
# Wrapper
# ----------------------------------------------------------------------------
@functools.partial(jax.jit, static_argnames=("embedding_dim", "num_hidden"))
def tabular_encoder_forward(x, w0t, b0p, wt_stack, gbb_stack, *, embedding_dim,
                            num_hidden):
    batch, in_features = x.shape
    f_pad, e_pad = w0t.shape

    x_p = x
    if f_pad != in_features:
        x_p = jnp.pad(x, ((0, 0), (0, f_pad - in_features)))
    x_p = x_p.astype(jnp.bfloat16)

    out_shape = jax.ShapeDtypeStruct((batch, e_pad), jnp.float32)
    vmem_spec = pl.BlockSpec(memory_space=pltpu.MemorySpace.VMEM)

    if num_hidden == 0:
        need = (batch * f_pad * 2 + f_pad * e_pad * 2 + 8 * e_pad * 4
                + batch * e_pad * 4)
        out_p = pl.pallas_call(
            _first_linear_kernel,
            out_shape=out_shape,
            in_specs=[vmem_spec] * 3,
            out_specs=vmem_spec,
            compiler_params=pltpu.CompilerParams(
                vmem_limit_bytes=_clamp_vmem(int(1.25 * need))),
        )(x_p, w0t, b0p)
        return out_p[:, :embedding_dim] if e_pad != embedding_dim else out_p

    # ---- Layer blocking: amortize per-grid-step overhead (~0.35 us/step). ----
    per_layer_bytes = e_pad * e_pad * 2 + 8 * e_pad * 4   # W (bf16) + gbb slab
    layer_budget = 8 * 1024 * 1024
    l_blk = 1
    for d in range(1, num_hidden + 1):
        if num_hidden % d == 0 and d * per_layer_bytes <= layer_budget:
            l_blk = d
    num_steps = num_hidden // l_blk

    # Hidden-weight buffering: single when everything is resident; deeper
    # (3) when streaming many small layer blocks (HBM weight-stream regime).
    if num_steps == 1:
        wt_buffers = 1
    elif num_steps >= 3 and l_blk * per_layer_bytes <= 2 * 1024 * 1024:
        wt_buffers = 3
    else:
        wt_buffers = 2

    # ---- VMEM budget (actual buffer counts, no 2x fudge) + capacity clamp. ----
    vmem_bytes = (
        batch * f_pad * 2                              # x (bf16), 1 buffer
        + f_pad * e_pad * 2                            # w0t (bf16), 1 buffer
        + 8 * e_pad * 4                                # b0 (f32, sublane-padded)
        + wt_buffers * l_blk * e_pad * e_pad * 2       # hidden W (bf16)
        + wt_buffers * l_blk * 8 * e_pad * 4           # gamma/beta/bias slabs
        + batch * e_pad * 4                            # out (f32), 1 buffer
        + batch * e_pad * 2                            # h scratch (bf16)
    )
    vmem_limit = _clamp_vmem(int(1.25 * vmem_bytes))

    flops = 2 * batch * f_pad * e_pad + num_hidden * 2 * batch * e_pad * e_pad
    bytes_accessed = (
        batch * f_pad * 2 + f_pad * e_pad * 2 + e_pad * 4
        + num_hidden * (e_pad * e_pad * 2 + 3 * e_pad * 4)
        + batch * e_pad * 4
    )

    grid_spec = pltpu.PrefetchScalarGridSpec(
        num_scalar_prefetch=0,
        grid=(num_steps,),
        in_specs=[
            pl.BlockSpec((batch, f_pad), lambda s: (0, 0),
                         pipeline_mode=pl.Buffered(1)),
            pl.BlockSpec((f_pad, e_pad), lambda s: (0, 0),
                         pipeline_mode=pl.Buffered(1)),
            pl.BlockSpec((1, e_pad), lambda s: (0, 0),
                         pipeline_mode=pl.Buffered(1)),
            pl.BlockSpec((l_blk, e_pad, e_pad), lambda s: (s, 0, 0),
                         pipeline_mode=pl.Buffered(wt_buffers)),
            pl.BlockSpec((l_blk, 3, e_pad), lambda s: (s, 0, 0),
                         pipeline_mode=pl.Buffered(wt_buffers)),
        ],
        out_specs=pl.BlockSpec((batch, e_pad), lambda s: (0, 0),
                               pipeline_mode=pl.Buffered(1)),
        scratch_shapes=[pltpu.VMEM((batch, e_pad), jnp.bfloat16)],
    )

    out_p = pl.pallas_call(
        functools.partial(_encoder_kernel, l_blk=l_blk),
        out_shape=out_shape,
        grid_spec=grid_spec,
        compiler_params=pltpu.CompilerParams(
            dimension_semantics=("arbitrary",),
            vmem_limit_bytes=vmem_limit,
        ),
        cost_estimate=pl.CostEstimate(
            flops=flops,
            transcendentals=num_hidden * e_pad,
            bytes_accessed=bytes_accessed,
        ),
    )(x_p, w0t, b0p, wt_stack, gbb_stack)
    return out_p[:, :embedding_dim] if e_pad != embedding_dim else out_p


# ----------------------------------------------------------------------------
# Parameter construction (PyTorch layout) + host-side packing
# ----------------------------------------------------------------------------
def init_params(key, input_size, embedding_dim, encoder_num_layers):
    """Mirrors TabularEncoder.init_weights(init_strat='normal'):
    Linear weights ~ N(0, 0.001), biases = 0, BN gamma=1, beta=0.
    Returned in PyTorch layout: w (out, in), vectors (E,)."""
    num_hidden = encoder_num_layers - 1
    keys = jax.random.split(key, 1 + max(num_hidden, 1))

    w0 = 0.001 * jax.random.normal(keys[0], (embedding_dim, input_size), jnp.float32)
    b0 = jnp.zeros((embedding_dim,), jnp.float32)
    hidden = []
    for i in range(num_hidden):
        gamma = jnp.ones((embedding_dim,), jnp.float32)
        beta = jnp.zeros((embedding_dim,), jnp.float32)
        w = 0.001 * jax.random.normal(
            keys[1 + i], (embedding_dim, embedding_dim), jnp.float32
        )
        b = jnp.zeros((embedding_dim,), jnp.float32)
        hidden.append((gamma, beta, w, b))
    return w0, b0, hidden


def pack_params(w0, b0, hidden, input_size, embedding_dim):
    """Pre-transpose to (in, out), zero-pad to 128-lane multiples, cast weights
    to bf16, and stack the hidden-layer params for grid streaming."""
    f_pad = _round_up(input_size, 128)
    e_pad = _round_up(embedding_dim, 128)

    w0t = (
        jnp.zeros((f_pad, e_pad), jnp.float32)
        .at[:input_size, :embedding_dim]
        .set(w0.T)
        .astype(jnp.bfloat16)
    )
    b0p = jnp.zeros((1, e_pad), jnp.float32).at[0, :embedding_dim].set(b0)

    if hidden:
        wt_stack = jnp.stack(
            [
                jnp.zeros((e_pad, e_pad), jnp.float32)
                .at[:embedding_dim, :embedding_dim]
                .set(w.T)
                for (_, _, w, _) in hidden
            ]
        ).astype(jnp.bfloat16)
        gbb_stack = jnp.stack(
            [
                jnp.stack(
                    [
                        jnp.zeros((e_pad,), jnp.float32).at[:embedding_dim].set(gamma),
                        jnp.zeros((e_pad,), jnp.float32).at[:embedding_dim].set(beta),
                        jnp.zeros((e_pad,), jnp.float32).at[:embedding_dim].set(b),
                    ]
                )
                for (gamma, beta, _, b) in hidden
            ]
        )
    else:
        wt_stack = jnp.zeros((1, e_pad, e_pad), jnp.bfloat16)
        gbb_stack = jnp.zeros((1, 3, e_pad), jnp.float32)

    return w0t, b0p, wt_stack, gbb_stack


def reference_forward(x, w0, b0, hidden):
    """Pure-JAX f32 reference with PyTorch (training-mode BN) semantics."""
    h = x @ w0.T + b0
    for gamma, beta, w, b in hidden:
        mean = jnp.mean(h, axis=0, keepdims=True)
        var = jnp.mean((h - mean) ** 2, axis=0, keepdims=True)
        h = gamma * (h - mean) * jax.lax.rsqrt(var + BN_EPS) + beta
        h = jnp.maximum(h, 0.0)
        h = h @ w.T + b
    return h


if __name__ == "__main__":
    batch = 8
    input_size = 32
    embedding_dim = 32
    encoder_num_layers = 3

    key = jax.random.PRNGKey(0)
    k_x, k_p = jax.random.split(key)

    x = jax.random.normal(k_x, (batch, input_size), jnp.float32)
    w0, b0, hidden = init_params(k_p, input_size, embedding_dim, encoder_num_layers)
    packed = pack_params(w0, b0, hidden, input_size, embedding_dim)

    out = tabular_encoder_forward(
        x, *packed, embedding_dim=embedding_dim, num_hidden=len(hidden)
    )
    out = jax.block_until_ready(out)

    ref = reference_forward(x, w0, b0, hidden)
    assert out.shape == (batch, embedding_dim)
    # bf16 matmul operands / bf16 activation carry (f32 accumulation and f32
    # BN statistics) give ~1e-3 relative error vs the f32 reference.
    assert jnp.allclose(out, ref, atol=2e-3, rtol=5e-2), float(
        jnp.max(jnp.abs(out - ref))
    )

    print("KERNEL_OK")
</pallas_src>

<mosaic_0001>
module attributes {stable_mosaic.version = 11 : i64} {
  func.func @_encoder_kernel(%arg0: i32, %arg1: memref<8x128xbf16, #tpu.memory_space<vmem>>, %arg2: memref<128x128xbf16, #tpu.memory_space<vmem>>, %arg3: memref<1x128xf32, #tpu.memory_space<vmem>>, %arg4: memref<2x128x128xbf16, #tpu.memory_space<vmem>>, %arg5: memref<2x3x128xf32, #tpu.memory_space<vmem>>, %arg6: memref<8x128xf32, #tpu.memory_space<vmem>>, %arg7: memref<8x128xbf16, #tpu.memory_space<vmem>>) attributes {dimension_semantics = [#tpu.dimension_semantics<arbitrary>], iteration_bounds = array<i64: 1>, scalar_prefetch = 0 : i64, scratch_operands = 1 : i64, tpu.core_type = #tpu.core_type<tc>, window_params = [{pipeline_mode = #tpu.pipeline_mode<synchronous>, transform_indices = @transform_0, window_bounds = array<i64: 8, 128>}, {pipeline_mode = #tpu.pipeline_mode<synchronous>, transform_indices = @transform_1, window_bounds = array<i64: 128, 128>}, {pipeline_mode = #tpu.pipeline_mode<synchronous>, transform_indices = @transform_2, window_bounds = array<i64: 1, 128>}, {pipeline_mode = #tpu.pipeline_mode<synchronous>, transform_indices = @transform_3, window_bounds = array<i64: 2, 128, 128>}, {pipeline_mode = #tpu.pipeline_mode<synchronous>, transform_indices = @transform_4, window_bounds = array<i64: 2, 3, 128>}, {pipeline_mode = #tpu.pipeline_mode<synchronous>, transform_indices = @transform_5, window_bounds = array<i64: 8, 128>}]} {
    %c0_i32 = arith.constant 0 : i32
    %0 = arith.cmpi eq, %arg0, %c0_i32 : i32
    %1 = arith.extui %0 : i1 to i32
    %c0_i32_0 = arith.constant 0 : i32
    %2 = arith.cmpi ne, %1, %c0_i32_0 : i32
    scf.if %2 {
      %c0_43 = arith.constant 0 : index
      %c0_44 = arith.constant 0 : index
      %85 = vector.load %arg1[%c0_43, %c0_44] : memref<8x128xbf16, #tpu.memory_space<vmem>>, vector<8x128xbf16>
      %c0_45 = arith.constant 0 : index
      %c0_46 = arith.constant 0 : index
      %86 = vector.load %arg2[%c0_45, %c0_46] : memref<128x128xbf16, #tpu.memory_space<vmem>>, vector<128x128xbf16>
      %cst_47 = arith.constant dense<0.000000e+00> : vector<8x128xf32>
      %87 = tpu.matmul %85, %86, %cst_47 {dimension_numbers = #tpu.dot_dimension_numbers<[1], [0], [0], [1], [0, 0, 1, 1], [], []>} : vector<8x128xbf16>, vector<128x128xbf16>, vector<8x128xf32> -> vector<8x128xf32>
      %c0_48 = arith.constant 0 : index
      %c0_49 = arith.constant 0 : index
      %88 = vector.load %arg3[%c0_48, %c0_49] : memref<1x128xf32, #tpu.memory_space<vmem>>, vector<1x128xf32>
      %89 = vector.broadcast %88 : vector<1x128xf32> to vector<8x128xf32>
      %90 = arith.addf %87, %89 : vector<8x128xf32>
      %91 = arith.truncf %90 : vector<8x128xf32> to vector<8x128xbf16>
      %c0_50 = arith.constant 0 : index
      %c0_51 = arith.constant 0 : index
      %92 = vector.load %arg7[%c0_50, %c0_51] : memref<8x128xbf16, #tpu.memory_space<vmem>>, vector<8x128xbf16>
      tpu.vector_store %arg7[%c0_50, %c0_51], %91 {strides = array<i32>} : memref<8x128xbf16, #tpu.memory_space<vmem>>, vector<8x128xbf16>,
    } else {
    }
    %c0 = arith.constant 0 : index
    %c0_1 = arith.constant 0 : index
    %3 = vector.load %arg7[%c0, %c0_1] : memref<8x128xbf16, #tpu.memory_space<vmem>>, vector<8x128xbf16>
    %4 = arith.extf %3 : vector<8x128xbf16> to vector<8x128xf32>
    %c0_2 = arith.constant 0 : index
    %c0_3 = arith.constant 0 : index
    %c0_4 = arith.constant 0 : index
    %5 = vector.load %arg5[%c0_2, %c0_3, %c0_4] : memref<2x3x128xf32, #tpu.memory_space<vmem>>, vector<1x1x128xf32>
    %6 = vector.shape_cast %5 : vector<1x1x128xf32> to vector<1x128xf32>
    %c0_5 = arith.constant 0 : index
    %c1 = arith.constant 1 : index
    %c0_6 = arith.constant 0 : index
    %7 = vector.load %arg5[%c0_5, %c1, %c0_6] : memref<2x3x128xf32, #tpu.memory_space<vmem>>, vector<1x1x128xf32>
    %8 = vector.shape_cast %7 : vector<1x1x128xf32> to vector<1x128xf32>
    %c0_7 = arith.constant 0 : index
    %c2 = arith.constant 2 : index
    %c0_8 = arith.constant 0 : index
    %9 = vector.load %arg5[%c0_7, %c2, %c0_8] : memref<2x3x128xf32, #tpu.memory_space<vmem>>, vector<1x1x128xf32>
    %10 = vector.shape_cast %9 : vector<1x1x128xf32> to vector<1x128xf32>
    %cst = arith.constant dense<0.000000e+00> : vector<128xf32>
    %11 = vector.multi_reduction <add>, %4, %cst [0] : vector<8x128xf32> to vector<128xf32>
    %12 = vector.shape_cast %11 : vector<128xf32> to vector<1x128xf32>
    %13 = arith.mulf %4, %4 : vector<8x128xf32>
    %cst_9 = arith.constant dense<0.000000e+00> : vector<128xf32>
    %14 = vector.multi_reduction <add>, %13, %cst_9 [0] : vector<8x128xf32> to vector<128xf32>
    %15 = vector.shape_cast %14 : vector<128xf32> to vector<1x128xf32>
    %cst_10 = arith.constant 1.250000e-01 : f32
    %16 = vector.broadcast %cst_10 : f32 to vector<1x128xf32>
    %17 = arith.mulf %12, %16 : vector<1x128xf32>
    %cst_11 = arith.constant 1.250000e-01 : f32
    %18 = vector.broadcast %cst_11 : f32 to vector<1x128xf32>
    %19 = arith.mulf %15, %18 : vector<1x128xf32>
    %20 = arith.mulf %17, %17 : vector<1x128xf32>
    %21 = arith.subf %19, %20 : vector<1x128xf32>
    %cst_12 = arith.constant 0.000000e+00 : f32
    %22 = vector.broadcast %cst_12 : f32 to vector<1x128xf32>
    %23 = arith.maximumf %21, %22 : vector<1x128xf32>
    %cst_13 = arith.constant 9.99999974E-6 : f32
    %24 = vector.broadcast %cst_13 : f32 to vector<1x128xf32>
    %25 = arith.addf %23, %24 : vector<1x128xf32>
    %26 = math.rsqrt %25 : vector<1x128xf32>
    %27 = arith.mulf %6, %26 : vector<1x128xf32>
    %28 = arith.mulf %17, %27 : vector<1x128xf32>
    %29 = arith.subf %8, %28 : vector<1x128xf32>
    %30 = vector.broadcast %27 : vector<1x128xf32> to vector<8x128xf32>
    %31 = arith.mulf %4, %30 : vector<8x128xf32>
    %32 = vector.broadcast %29 : vector<1x128xf32> to vector<8x128xf32>
    %33 = arith.addf %31, %32 : vector<8x128xf32>
    %cst_14 = arith.constant 0.000000e+00 : f32
    %34 = vector.broadcast %cst_14 : f32 to vector<8x128xf32>
    %35 = arith.maximumf %33, %34 : vector<8x128xf32>
    %36 = arith.truncf %35 : vector<8x128xf32> to vector<8x128xbf16>
    %c0_15 = arith.constant 0 : index
    %c0_16 = arith.constant 0 : index
    %c0_17 = arith.constant 0 : index
    %37 = vector.load %arg4[%c0_15, %c0_16, %c0_17] : memref<2x128x128xbf16, #tpu.memory_space<vmem>>, vector<1x128x128xbf16>
    %38 = vector.shape_cast %37 : vector<1x128x128xbf16> to vector<128x128xbf16>
    %cst_18 = arith.constant dense<0.000000e+00> : vector<8x128xf32>
    %39 = tpu.matmul %36, %38, %cst_18 {dimension_numbers = #tpu.dot_dimension_numbers<[1], [0], [0], [1], [0, 0, 1, 1], [], []>} : vector<8x128xbf16>, vector<128x128xbf16>, vector<8x128xf32> -> vector<8x128xf32>
    %40 = vector.broadcast %10 : vector<1x128xf32> to vector<8x128xf32>
    %41 = arith.addf %39, %40 : vector<8x128xf32>
    %c1_19 = arith.constant 1 : index
    %c0_20 = arith.constant 0 : index
    %c0_21 = arith.constant 0 : index
    %42 = vector.load %arg5[%c1_19, %c0_20, %c0_21] : memref<2x3x128xf32, #tpu.memory_space<vmem>>, vector<1x1x128xf32>
    %43 = vector.shape_cast %42 : vector<1x1x128xf32> to vector<1x128xf32>
    %c1_22 = arith.constant 1 : index
    %c1_23 = arith.constant 1 : index
    %c0_24 = arith.constant 0 : index
    %44 = vector.load %arg5[%c1_22, %c1_23, %c0_24] : memref<2x3x128xf32, #tpu.memory_space<vmem>>, vector<1x1x128xf32>
    %45 = vector.shape_cast %44 : vector<1x1x128xf32> to vector<1x128xf32>
    %c1_25 = arith.constant 1 : index
    %c2_26 = arith.constant 2 : index
    %c0_27 = arith.constant 0 : index
    %46 = vector.load %arg5[%c1_25, %c2_26, %c0_27] : memref<2x3x128xf32, #tpu.memory_space<vmem>>, vector<1x1x128xf32>
    %47 = vector.shape_cast %46 : vector<1x1x128xf32> to vector<1x128xf32>
    %cst_28 = arith.constant dense<0.000000e+00> : vector<128xf32>
    %48 = vector.multi_reduction <add>, %41, %cst_28 [0] : vector<8x128xf32> to vector<128xf32>
    %49 = vector.shape_cast %48 : vector<128xf32> to vector<1x128xf32>
    %50 = arith.mulf %41, %41 : vector<8x128xf32>
    %cst_29 = arith.constant dense<0.000000e+00> : vector<128xf32>
    %51 = vector.multi_reduction <add>, %50, %cst_29 [0] : vector<8x128xf32> to vector<128xf32>
    %52 = vector.shape_cast %51 : vector<128xf32> to vector<1x128xf32>
    %cst_30 = arith.constant 1.250000e-01 : f32
    %53 = vector.broadcast %cst_30 : f32 to vector<1x128xf32>
    %54 = arith.mulf %49, %53 : vector<1x128xf32>
    %cst_31 = arith.constant 1.250000e-01 : f32
    %55 = vector.broadcast %cst_31 : f32 to vector<1x128xf32>
    %56 = arith.mulf %52, %55 : vector<1x128xf32>
    %57 = arith.mulf %54, %54 : vector<1x128xf32>
    %58 = arith.subf %56, %57 : vector<1x128xf32>
    %cst_32 = arith.constant 0.000000e+00 : f32
    %59 = vector.broadcast %cst_32 : f32 to vector<1x128xf32>
    %60 = arith.maximumf %58, %59 : vector<1x128xf32>
    %cst_33 = arith.constant 9.99999974E-6 : f32
    %61 = vector.broadcast %cst_33 : f32 to vector<1x128xf32>
    %62 = arith.addf %60, %61 : vector<1x128xf32>
    %63 = math.rsqrt %62 : vector<1x128xf32>
    %64 = arith.mulf %43, %63 : vector<1x128xf32>
    %65 = arith.mulf %54, %64 : vector<1x128xf32>
    %66 = arith.subf %45, %65 : vector<1x128xf32>
    %67 = vector.broadcast %64 : vector<1x128xf32> to vector<8x128xf32>
    %68 = arith.mulf %41, %67 : vector<8x128xf32>
    %69 = vector.broadcast %66 : vector<1x128xf32> to vector<8x128xf32>
    %70 = arith.addf %68, %69 : vector<8x128xf32>
    %cst_34 = arith.constant 0.000000e+00 : f32
    %71 = vector.broadcast %cst_34 : f32 to vector<8x128xf32>
    %72 = arith.maximumf %70, %71 : vector<8x128xf32>
    %73 = arith.truncf %72 : vector<8x128xf32> to vector<8x128xbf16>
    %c1_35 = arith.constant 1 : index
    %c0_36 = arith.constant 0 : index
    %c0_37 = arith.constant 0 : index
    %74 = vector.load %arg4[%c1_35, %c0_36, %c0_37] : memref<2x128x128xbf16, #tpu.memory_space<vmem>>, vector<1x128x128xbf16>
    %75 = vector.shape_cast %74 : vector<1x128x128xbf16> to vector<128x128xbf16>
    %cst_38 = arith.constant dense<0.000000e+00> : vector<8x128xf32>
    %76 = tpu.matmul %73, %75, %cst_38 {dimension_numbers = #tpu.dot_dimension_numbers<[1], [0], [0], [1], [0, 0, 1, 1], [], []>} : vector<8x128xbf16>, vector<128x128xbf16>, vector<8x128xf32> -> vector<8x128xf32>
    %77 = vector.broadcast %47 : vector<1x128xf32> to vector<8x128xf32>
    %78 = arith.addf %76, %77 : vector<8x128xf32>
    %c0_i32_39 = arith.constant 0 : i32
    %79 = arith.cmpi ne, %arg0, %c0_i32_39 : i32
    %80 = arith.extui %79 : i1 to i32
    %c0_i32_40 = arith.constant 0 : i32
    %81 = arith.cmpi ne, %80, %c0_i32_40 : i32
    scf.if %81 {
      %85 = arith.truncf %78 : vector<8x128xf32> to vector<8x128xbf16>
      %c0_43 = arith.constant 0 : index
      %c0_44 = arith.constant 0 : index
      %86 = vector.load %arg7[%c0_43, %c0_44] : memref<8x128xbf16, #tpu.memory_space<vmem>>, vector<8x128xbf16>
      tpu.vector_store %arg7[%c0_43, %c0_44], %85 {strides = array<i32>} : memref<8x128xbf16, #tpu.memory_space<vmem>>, vector<8x128xbf16>,
    } else {
    }
    %c0_i32_41 = arith.constant 0 : i32
    %82 = arith.cmpi eq, %arg0, %c0_i32_41 : i32
    %83 = arith.extui %82 : i1 to i32
    %c0_i32_42 = arith.constant 0 : i32
    %84 = arith.cmpi ne, %83, %c0_i32_42 : i32
    scf.if %84 {
      %c0_43 = arith.constant 0 : index
      %c0_44 = arith.constant 0 : index
      %85 = vector.load %arg6[%c0_43, %c0_44] : memref<8x128xf32, #tpu.memory_space<vmem>>, vector<8x128xf32>
      tpu.vector_store %arg6[%c0_43, %c0_44], %78 {strides = array<i32>} : memref<8x128xf32, #tpu.memory_space<vmem>>, vector<8x128xf32>,
    } else {
    }
    return
  }
  func.func @transform_0(%arg0: i32) -> (i32, i32) {
    %c0_i32 = arith.constant 0 : i32
    %c0_i32_0 = arith.constant 0 : i32
    %c0_i32_1 = arith.constant 0 : i32
    return %c0_i32, %c0_i32_0 : i32, i32
  }
  func.func @transform_1(%arg0: i32) -> (i32, i32) {
    %c0_i32 = arith.constant 0 : i32
    %c0_i32_0 = arith.constant 0 : i32
    %c0_i32_1 = arith.constant 0 : i32
    return %c0_i32, %c0_i32_0 : i32, i32
  }
  func.func @transform_2(%arg0: i32) -> (i32, i32) {
    %c0_i32 = arith.constant 0 : i32
    %c0_i32_0 = arith.constant 0 : i32
    %c0_i32_1 = arith.constant 0 : i32
    return %c0_i32, %c0_i32_0 : i32, i32
  }
  func.func @transform_3(%arg0: i32) -> (i32, i32, i32) {
    %c0_i32 = arith.constant 0 : i32
    %c0_i32_0 = arith.constant 0 : i32
    %c0_i32_1 = arith.constant 0 : i32
    return %arg0, %c0_i32, %c0_i32_0 : i32, i32, i32
  }
  func.func @transform_4(%arg0: i32) -> (i32, i32, i32) {
    %c0_i32 = arith.constant 0 : i32
    %c0_i32_0 = arith.constant 0 : i32
    %c0_i32_1 = arith.constant 0 : i32
    return %arg0, %c0_i32, %c0_i32_0 : i32, i32, i32
  }
  func.func @transform_5(%arg0: i32) -> (i32, i32) {
    %c0_i32 = arith.constant 0 : i32
    %c0_i32_0 = arith.constant 0 : i32
    %c0_i32_1 = arith.constant 0 : i32
    return %c0_i32, %c0_i32_0 : i32, i32
  }
}

</mosaic_0001>

<bundles_post_ra>
// kernel: tabular_encoder_forward.1
= control target key start
LH: loop header
LB: loop body
LE: loop exit
PB: predicated region body
PF: predicated region fallthrough
CT: control target
= control target key end

     0   :  { %10 = vsyncpa [#allocation4], 0  ;;  %s847_s0 = inlined_call_operand.vmem [shape: bf16[8,128], index: 0, kind: input, shape index: {}]   ;;  %s848_s1 = inlined_call_operand.hbm [shape: bf16[128,128], index: 1, kind: input, shape index: {}]   ;;  %s849_s2 = inlined_call_operand.vmem [shape: f32[1,128], index: 2, kind: input, shape index: {}]   ;;  %s850_s3 = inlined_call_operand.hbm [shape: bf16[2,128,128], index: 3, kind: input, shape index: {}]   ;;  %s851_s4 = inlined_call_operand.vmem [shape: f32[2,3,128], index: 4, kind: input, shape index: {}]   ;;  %s852_s5 = inlined_call_operand.hbm [shape: f32[8,128], index: 5, kind: output, shape index: {}]  }
   0x1   :  { %11 = vsyncpa [#allocation7], 0 }
   0x2   :  { %12 = vsyncpa [#allocation5], 0  ;;  %s714_s18 = smov [#allocation3]   ;;  %s642_s22 = scalar_lea.hbm %s848_s1, 1024 }
   0x3   :  { %s20_s19 = sshll.u32 %s714_s18, 4  ;;  %p643_p0 = scmp.ne.s32.totalorder %s848_s1, %s642_s22  ;;  %s21_s19 = int_to_ptr.vmem [resolvable:$true] %s20_s19 }
   0x4   :  { %p646_p1 = scmp.lt.u32.totalorder %s642_s22, %s848_s1 }
   0x6   :  { %p648_p2 = pnand %p646_p1, %p643_p0 }
   0x8   :  { %651 = shalt.err (!%p648_p2)
}
   0x9   :  { %s652_s27 = scalar_lea.vmem %s21_s19, 1024  ;;  %p657_p4 = scmp.lt.s32.totalorder %s21_s19, %s21_s19 }
   0xa   :  { %p653_p3 = scmp.ne.s32.totalorder %s21_s19, %s652_s27  ;;  %p658_p5 = scmp.lt.s32.totalorder %s652_s27, %s652_s27 }
   0xc   :  { %p659_p6 = por %p658_p5, %p657_p4 }
   0xe   :  { %p660_p7 = pnand %p659_p6, %p653_p3 }
  0x10   :  { %663 = shalt.err (!%p660_p7)
}
  0x11   :  { %s715_s28 = smov 64   ;;  %s716_s29 = smov 4  }
  0x12   :  { %26 = dma.hbm_to_vmem [thread:$0]  %s848_s1, 1024, %s21_s19, [#allocation4], %s715_s28, %s715_s28, %s716_s29  }
  0x13   :  { %s717_s7 = smov [#allocation6]   ;;  %s664_s11 = scalar_lea.hbm %s850_s3, 2048 }
  0x14   :  { %s34_s8 = sshll.u32 %s717_s7, 4  ;;  %p665_p8 = scmp.ne.s32.totalorder %s850_s3, %s664_s11  ;;  %s35_s8 = int_to_ptr.vmem [resolvable:$true] %s34_s8 }
  0x15   :  { %p668_p9 = scmp.lt.u32.totalorder %s664_s11, %s850_s3 }
  0x17   :  { %p670_p10 = pnand %p668_p9, %p665_p8 }
  0x19   :  { %673 = shalt.err (!%p670_p10)
}
  0x1a   :  { %s674_s16 = scalar_lea.vmem %s35_s8, 2048  ;;  %p679_p12 = scmp.lt.s32.totalorder %s35_s8, %s35_s8 }
  0x1b   :  { %p675_p11 = scmp.ne.s32.totalorder %s35_s8, %s674_s16  ;;  %p680_p13 = scmp.lt.s32.totalorder %s674_s16, %s674_s16 }
  0x1d   :  { %p681_p0 = por %p680_p13, %p679_p12 }
  0x1f   :  { %p682_p1 = pnand %p681_p0, %p675_p11 }
  0x21   :  { %685 = shalt.err (!%p682_p1)
}
  0x22   :  { %40 = dma.hbm_to_vmem [thread:$0]  %s850_s3, 2048, %s35_s8, [#allocation7], %s715_s28, %s715_s28, %s716_s29  }
  0x23   :  { %708 = dma.done.wait [#allocation4], 1024  }
  0x24   :  { %709 = vsyncadd [#allocation4], 4294966272 }
  0x25   :  { %710 = dma.done.wait [#allocation7], 2048  }
  0x26   :  { %711 = vsyncadd [#allocation7], 4294965248  ;;  %v718_v0 = vmov 0.0   ;;  %vm719_vm0 = vmmov 0   ;;  %v614_v1 = vld [vmem:[#allocation3] sm:$0xff]   ;;  %v615_v2 = vld [vmem:[#allocation3 + $0x8] sm:$0xff]   ;;  %v196_v46 = vlaneseq }
  0x27   :  { %547 = vmatprep.subr.bf16.mxu0 %v718_v0  ;;  %563 = vmatprep.mubr.msk.bf16.mxu0 %vm719_vm0, %v718_v0  ;;  %v616_v3 = vld [vmem:[#allocation3 + $0x10] sm:$0xff]   ;;  %v617_v4 = vld [vmem:[#allocation3 + $0x18] sm:$0xff]   ;;  %v618_v5 = vld [vmem:[#allocation3 + $0x20] sm:$0xff]   ;;  %s720_s6 = smov [#allocation8]  }
  0x28   :  { %567 = vmatprep.subr.bf16.mxu1 %v718_v0  ;;  %583 = vmatprep.mubr.msk.bf16.mxu1 %vm719_vm0, %v718_v0  ;;  %v619_v6 = vld [vmem:[#allocation3 + $0x28] sm:$0xff]   ;;  %v620_v7 = vld [vmem:[#allocation3 + $0x30] sm:$0xff]   ;;  %v621_v8 = vld [vmem:[#allocation3 + $0x38] sm:$0xff]   ;;  %v197_v47 = vshrl.u32 %v196_v46, 7  ;;  %s480_s7 = sshll.u32 %s720_s6, 4  ;;  %s481_s7 = int_to_ptr.vmem [resolvable:$true] %s480_s7 }
  0x29   :  { %548 = vmatpush3.bf16.msra.mxu0 %v614_v1  ;;  %v54_v9 = vld [vmem:[%s847_s0] sm:$0xf]  ;;  %v622_v10 = vld [vmem:[#allocation6] sm:$0xff]   ;;  %v623_v11 = vld [vmem:[#allocation6 + $0x8] sm:$0xff]   ;;  %s686_s8 = scalar_lea.vmem %s481_s7, 128  ;;  %p691_p3 = scmp.lt.s32.totalorder %s481_s7, %s481_s7 }
  0x2a   :  { %549 = vmatprep.subr.bf16.mxu0 %v718_v0  ;;  %568 = vmatpush3.bf16.msra.mxu1 %v622_v10  ;;  %v624_v12 = vld [vmem:[#allocation6 + $0x10] sm:$0xff]   ;;  %v625_v13 = vld [vmem:[#allocation6 + $0x18] sm:$0xff]   ;;  %v626_v14 = vld [vmem:[#allocation6 + $0x20] sm:$0xff]   ;;  %v807_v49 = vsub.s32 0, %v197_v47  ;;  %p687_p2 = scmp.ne.s32.totalorder %s481_s7, %s686_s8  ;;  %p692_p4 = scmp.lt.s32.totalorder %s686_s8, %s686_s8 }
  0x2b   :  { %569 = vmatprep.subr.bf16.mxu1 %v718_v0  ;;  %v627_v15 = vld [vmem:[#allocation6 + $0x28] sm:$0xff]   ;;  %v628_v16 = vld [vmem:[#allocation6 + $0x30] sm:$0xff]   ;;  %v629_v17 = vld [vmem:[#allocation6 + $0x38] sm:$0xff]  }
  0x2c   :  { %v490_v18 = vld [vmem:[%s849_s2] ss:$0 sm:$0xff]  ;;  %v171_v52 = vld [vmem:[%s851_s4 + $0x1] sm:$0x1]  ;;  %v630_v61 = vld [vmem:[#allocation6 + $0x40] sm:$0xff]   ;;  %p693_p5 = por %p692_p4, %p691_p3 }
  0x2d   :  { %550 = vmatpush3.bf16.msra.mxu0 %v615_v2  ;;  %v170_v48 = vld [vmem:[%s851_s4] sm:$0x1]  ;;  %v631_v62 = vld [vmem:[#allocation6 + $0x48] sm:$0xff]   ;;  %v633_v1 = vld [vmem:[#allocation6 + $0x58] sm:$0xff]  }
  0x2e   :  { %551 = vmatprep.subr.bf16.mxu0 %v718_v0  ;;  %570 = vmatpush3.bf16.msra.mxu1 %v623_v11  ;;  %v632_v63 = vld [vmem:[#allocation6 + $0x50] sm:$0xff]   ;;  %v634_v2 = vld [vmem:[#allocation6 + $0x60] sm:$0xff]   ;;  %p694_p6 = pnand %p693_p5, %p687_p2 }
  0x2f   :  { %571 = vmatprep.subr.bf16.mxu1 %v718_v0 }
  0x31   :  { %552 = vmatpush3.bf16.msra.mxu0 %v616_v3  ;;  %v635_v3 = vld [vmem:[#allocation6 + $0x68] sm:$0xff]  }
  0x32   :  { %553 = vmatprep.subr.bf16.mxu0 %v718_v0  ;;  %572 = vmatpush3.bf16.msra.mxu1 %v624_v12 }
  0x33   :  { %573 = vmatprep.subr.bf16.mxu1 %v718_v0 }
  0x35   :  { %554 = vmatpush3.bf16.msra.mxu0 %v617_v4  ;;  %v636_v4 = vld [vmem:[#allocation6 + $0x70] sm:$0xff]  }
  0x36   :  { %555 = vmatprep.subr.bf16.mxu0 %v718_v0  ;;  %574 = vmatpush3.bf16.msra.mxu1 %v625_v13 }
  0x37   :  { %575 = vmatprep.subr.bf16.mxu1 %v718_v0 }
  0x39   :  { %556 = vmatpush3.bf16.msra.mxu0 %v618_v5  ;;  %v637_v5 = vld [vmem:[#allocation6 + $0x78] sm:$0xff]  }
  0x3a   :  { %557 = vmatprep.subr.bf16.mxu0 %v718_v0  ;;  %576 = vmatpush3.bf16.msra.mxu1 %v626_v14 }
  0x3b   :  { %577 = vmatprep.subr.bf16.mxu1 %v718_v0 }
  0x3d   :  { %558 = vmatpush3.bf16.msra.mxu0 %v619_v6  ;;  %v499_v6 = vld [vmem:[%s851_s4 + $0x2] ss:$0 sm:$0xff] }
  0x3e   :  { %559 = vmatprep.subr.bf16.mxu0 %v718_v0  ;;  %578 = vmatpush3.bf16.msra.mxu1 %v627_v15 }
  0x3f   :  { %579 = vmatprep.subr.bf16.mxu1 %v718_v0 }
  0x41   :  { %560 = vmatpush3.bf16.msra.mxu0 %v620_v7 }
  0x42   :  { %561 = vmatprep.subr.bf16.mxu0 %v718_v0  ;;  %580 = vmatpush3.bf16.msra.mxu1 %v628_v16 }
  0x43   :  { %581 = vmatprep.subr.bf16.mxu1 %v718_v0 }
  0x45   :  { %562 = vmatpush3.bf16.msra.mxu0 %v621_v8 }
  0x46   :  { %587 = vmatprep.subr.bf16.mxu0 %v718_v0  ;;  %582 = vmatpush3.bf16.msra.mxu1 %v629_v17 }
  0x48   :  { %564 = vmatmul.mubr.bf16.vlgmr.msra.gmra.mrb[0].mxu0 %v54_v9 }
  0x49   :  { %603 = vmatprep.mubr.msk.bf16.mxu0 %vm719_vm0, %v718_v0  ;;  %588 = vmatpush3.bf16.msra.mxu0 %v630_v61 }
  0x4a   :  { %589 = vmatprep.subr.bf16.mxu0 %v718_v0 }
  0x4d   :  { %590 = vmatpush3.bf16.msra.mxu0 %v631_v62 }
  0x4e   :  { %591 = vmatprep.subr.bf16.mxu0 %v718_v0 }
  0x51   :  { %592 = vmatpush3.bf16.msra.mxu0 %v632_v63 }
  0x52   :  { %593 = vmatprep.subr.bf16.mxu0 %v718_v0 }
  0x55   :  { %594 = vmatpush3.bf16.msra.mxu0 %v633_v1 }
  0x56   :  { %595 = vmatprep.subr.bf16.mxu0 %v718_v0 }
  0x59   :  { %596 = vmatpush3.bf16.msra.mxu0 %v634_v2 }
  0x5a   :  { %597 = vmatprep.subr.bf16.mxu0 %v718_v0 }
  0x5d   :  { %598 = vmatpush3.bf16.msra.mxu0 %v635_v3 }
  0x5e   :  { %599 = vmatprep.subr.bf16.mxu0 %v718_v0 }
  0x61   :  { %600 = vmatpush3.bf16.msra.mxu0 %v636_v4 }
  0x62   :  { %601 = vmatprep.subr.bf16.mxu0 %v718_v0 }
  0x65   :  { %602 = vmatpush3.bf16.msra.mxu0 %v637_v5 }
 0x11b   :  { %v160_v19 = vpop.f32.mrb[0].mxu0 }
 0x11c   :  { %v161_v20 = vadd.f32 %v490_v18, %v160_v19  ;;  %v565_v21 = vpop.f32.mrb[1].mxu0 }
 0x11d   :  { %v163_v22 = vpop.f32.mrb[2].mxu0 }
 0x11e   :  { %v166_v23 = vpack.c.bf16 %v161_v20, %v161_v20  ;;  %v566_v24 = vpop.f32.mrb[3].mxu0 }
 0x120   :  { %167 = vst [vmem:[#allocation2] sm:$0xf] %v166_v23 }
 0x127   :  { %v168_v25 = vld [vmem:[#allocation2] sm:$0xf] }
 0x128   :  { %v169_v26 = vunpack.c.l.bf16 %v168_v25 }
 0x12a   :  { %v173_v27 = vrot.slane %v169_v26, 4  ;;  %v179_v28 = vmul.f32 %v169_v26, %v169_v26 }
 0x12c   :  { %v174_v29 = vadd.f32 %v173_v27, %v169_v26  ;;  %v180_v30 = vrot.slane %v179_v28, 4 }
 0x12e   :  { %v175_v31 = vrot.slane %v174_v29, 2  ;;  %v181_v32 = vadd.f32 %v180_v30, %v179_v28  ;;  %v508_v30 = vld [vmem:[%s851_s4 + $0x4] sm:$0x1] }
 0x130   :  { %v176_v33 = vadd.f32 %v175_v31, %v174_v29  ;;  %v182_v34 = vrot.slane %v181_v32, 2 }
 0x132   :  { %v177_v35 = vrot.slane %v176_v33, 1  ;;  %v183_v36 = vadd.f32 %v182_v34, %v181_v32 }
 0x134   :  { %v178_v37 = vadd.f32 %v177_v35, %v176_v33  ;;  %v184_v38 = vrot.slane %v183_v36, 1  ;;  %v509_v33 = vld [vmem:[%s851_s4 + $0x5] sm:$0x1] }
 0x136   :  { %v185_v39 = vadd.f32 %v184_v38, %v183_v36  ;;  %v186_v40 = vmul.f32 0.125, %v178_v37 }
 0x138   :  { %v187_v41 = vmul.f32 0.125, %v185_v39  ;;  %v188_v42 = vmul.f32 %v186_v40, %v186_v40 }
 0x13a   :  { %v189_v43 = vsub.f32 %v187_v41, %v188_v42  ;;  %v511_v42 = vld [vmem:[%s851_s4 + $0x6] ss:$0 sm:$0xff] }
 0x13c   :  { %v190_v44 = vmax.f32 %v189_v43, 0.0 }
 0x13e   :  { %v191_v45 = vadd.f32 1e-05, %v190_v44 }
 0x140   :  { %638 = vrsqrt.f32 %v191_v45 }
 0x14a   :  { %v639_v50 = vpop.eup %638 }
 0x14b   :  { %v193_v51 = vmul.f32 %v639_v50, %v170_v48 }
 0x14d   :  { %v194_v53 = vmul.f32 %v193_v51, %v186_v40  ;;  %v199_v54 = vrot.slane %v193_v51, %v807_v49 }
 0x14f   :  { %v195_v55 = vsub.f32 %v171_v52, %v194_v53  ;;  %v200_v56 = vmul.f32 %v199_v54, %v169_v26 }
 0x151   :  { %v204_v57 = vrot.slane %v195_v55, %v807_v49 }
 0x153   :  { %v205_v58 = vadd.f32 %v204_v57, %v200_v56 }
 0x155   :  { %v206_v59 = vmax.f32 %v205_v58, 0.0 }
 0x157   :  { %v207_v60 = vpack.c.bf16 %v206_v59, %v206_v59 }
 0x159   :  { %584 = vmatmul.mubr.bf16.vlgmr.msra.gmra.mrb[0].mxu1 %v207_v60 }
 0x22c   :  { %v310_v7 = vpop.f32.mrb[0].mxu1 }
 0x22d   :  { %v311_v8 = vadd.f32 %v499_v6, %v310_v7  ;;  %v585_v9 = vpop.f32.mrb[1].mxu1 }
 0x22e   :  { %v313_v10 = vpop.f32.mrb[2].mxu1 }
 0x22f   :  { %v320_v11 = vrot.slane %v311_v8, 4  ;;  %v326_v12 = vmul.f32 %v311_v8, %v311_v8  ;;  %v586_v13 = vpop.f32.mrb[3].mxu1 }
 0x231   :  { %v321_v14 = vadd.f32 %v320_v11, %v311_v8  ;;  %v327_v15 = vrot.slane %v326_v12, 4 }
 0x233   :  { %v322_v16 = vrot.slane %v321_v14, 2  ;;  %v328_v17 = vadd.f32 %v327_v15, %v326_v12 }
 0x235   :  { %v323_v18 = vadd.f32 %v322_v16, %v321_v14  ;;  %v329_v19 = vrot.slane %v328_v17, 2 }
 0x237   :  { %v324_v20 = vrot.slane %v323_v18, 1  ;;  %v330_v0 = vadd.f32 %v329_v19, %v328_v17 }
 0x239   :  { %v325_v21 = vadd.f32 %v324_v20, %v323_v18  ;;  %v331_v22 = vrot.slane %v330_v0, 1 }
 0x23b   :  { %v332_v23 = vadd.f32 %v331_v22, %v330_v0  ;;  %v333_v24 = vmul.f32 0.125, %v325_v21 }
 0x23d   :  { %v334_v25 = vmul.f32 0.125, %v332_v23  ;;  %v335_v26 = vmul.f32 %v333_v24, %v333_v24 }
 0x23f   :  { %v336_v27 = vsub.f32 %v334_v25, %v335_v26 }
 0x241   :  { %v337_v28 = vmax.f32 %v336_v27, 0.0 }
 0x243   :  { %v338_v29 = vadd.f32 1e-05, %v337_v28 }
 0x245   :  { %640 = vrsqrt.f32 %v338_v29 }
 0x24f   :  { %v641_v31 = vpop.eup %640 }
 0x250   :  { %v340_v32 = vmul.f32 %v641_v31, %v508_v30 }
 0x252   :  { %v346_v34 = vrot.slane %v340_v32, %v807_v49  ;;  %v341_v35 = vmul.f32 %v340_v32, %v333_v24 }
 0x254   :  { %v342_v36 = vsub.f32 %v509_v33, %v341_v35  ;;  %v347_v37 = vmul.f32 %v346_v34, %v311_v8 }
 0x256   :  { %v351_v38 = vrot.slane %v342_v36, %v807_v49 }
 0x258   :  { %v352_v39 = vadd.f32 %v351_v38, %v347_v37 }
 0x25a   :  { %v353_v40 = vmax.f32 %v352_v39, 0.0 }
 0x25c   :  { %v354_v41 = vpack.c.bf16 %v353_v40, %v353_v40 }
 0x25e   :  { %604 = vmatmul.mubr.bf16.vlgmr.msra.gmra.mrb[4].mxu0 %v354_v41 }
 0x331   :  { %v458_v43 = vpop.f32.mrb[4].mxu0 }
 0x332   :  { %v459_v44 = vadd.f32 %v511_v42, %v458_v43  ;;  %v605_v45 = vpop.f32.mrb[5].mxu0 }
 0x333   :  { %v461_v46 = vpop.f32.mrb[6].mxu0 }
 0x334   :  { %473 = vst [vmem:[#allocation8] sm:$0xff] %v459_v44  ;;  %v606_v47 = vpop.f32.mrb[7].mxu0 }
 0x335   :  { %697 = shalt.err (!%p694_p6)
}
 0x336   :  { %s698_s4 = scalar_lea.hbm %s852_s5, 128 }
 0x337   :  { %p699_p7 = scmp.ne.s32.totalorder %s852_s5, %s698_s4  ;;  %p702_p8 = scmp.lt.u32.totalorder %s698_s4, %s852_s5 }
 0x339   :  { %p704_p9 = pnand %p702_p8, %p699_p7 }
 0x33b   :  { %707 = shalt.err (!%p704_p9)
}
 0x33c   :  { %483 = dma.vmem_to_hbm [thread:$0]  %s481_s7, 128, %s852_s5, [#allocation5]  }
 0x33d   :  { %712 = dma.done.wait [#allocation5], 128  }
 0x33e   :  { %713 = vsyncadd [#allocation5], 4294967168 }
 0x33f   :  { %487 = vsyncpa [#allocation4], 1 }
 0x340   :  { %488 = vsyncpa [#allocation7], 1 }
 0x341   :  { %489 = vsyncpa [#allocation5], 1 }

</bundles_post_ra>
